<compile_context>
chip_gen: v7x
topology: tpu7x:2x2x1
jax: 0.10.0
libtpu: 0.0.40
codegen_flags: <defaults>
</compile_context>

<pallas_src>
import numpy as np

import jax
import jax.numpy as jnp
from jax.experimental import pallas as pl
from jax.experimental.pallas import tpu as pltpu


# ---------------------------------------------------------------------------
# Helpers
# ---------------------------------------------------------------------------
def _round_up(x, m):
    return ((x + m - 1) // m) * m


def _sublane_pack(dtype):
    """Rows per vreg sublane group: 8 for 4-byte, 16 for 2-byte dtypes."""
    return 8 * max(1, 4 // jnp.dtype(dtype).itemsize)


def _vmem_limit_bytes(default=48 * 1024 * 1024):
    """Generation-aware VMEM budget: ~3/4 of physical capacity.

    ~96 MiB on v5e/v6e (128 MiB physical), ~48 MiB on v7x (64 MiB physical).
    """
    try:
        cap = getattr(pltpu.get_tpu_info(), "vmem_capacity_bytes", None)
        if cap:
            return int(cap) * 3 // 4
    except Exception:
        pass
    return default


def _choose_k_tiling(c_in_max, pack, *, max_tile_k=1024, k_tile=512):
    """Returns (c_in_pad, tile_k). tile_k == c_in_pad means no K tiling."""
    c_in_pad = _round_up(max(c_in_max, pack), pack)
    if c_in_pad <= max_tile_k:
        return c_in_pad, c_in_pad
    # K-tiled: tile must be lane-dense on x's last dim -> multiple of 128.
    k_tile = _round_up(max(k_tile, 128), 128)
    c_in_pad = _round_up(c_in_max, k_tile)
    return c_in_pad, k_tile


def _choose_n_tiling(c_out, *, max_tile_n=512, n_tile=256):
    """Returns (c_out_pad, tile_n). Small c_out keeps its true width."""
    if c_out < 128:
        return c_out, c_out                     # masked vst < 4x write amp
    c_out_pad = _round_up(c_out, 128)
    if c_out_pad <= max_tile_n:
        return c_out_pad, c_out_pad
    n_tile = _round_up(max(n_tile, 128), 128)   # 256 matches v6e/v7x MXU width
    c_out_pad = _round_up(c_out, n_tile)
    return c_out_pad, n_tile


def _pick_tile_rows(counts, min_rows, cap=512):
    """Largest power-of-two row tile (<=cap) with modest total row padding."""
    total = max(sum(counts), 1)
    tr = cap
    while tr > min_rows:
        padded = sum(_round_up(max(n, 1), tr) for n in counts)
        if padded <= 1.25 * total + min_rows * len(counts):
            return tr
        tr //= 2
    return min_rows


# ---------------------------------------------------------------------------
# Kernels
# ---------------------------------------------------------------------------
def _grouped_linear_kernel(gid_ref, x_ref, w_ref, b_ref, o_ref):
    # Single K step: x [tr, Cin]  w [1, Cin, tn]  b [1, 1, tn]  o [tr, tn]
    acc = jnp.dot(x_ref[...], w_ref[0], preferred_element_type=jnp.float32)
    o_ref[...] = (acc + b_ref[0]).astype(o_ref.dtype)


def _grouped_linear_kernel_kacc(gid_ref, x_ref, w_ref, b_ref, o_ref, acc_ref):
    # K-tiled path: f32 VMEM accumulator, init at k==0, emit (+bias) at last k.
    k = pl.program_id(2)

    @pl.when(k == 0)
    def _():
        acc_ref[...] = jnp.zeros_like(acc_ref)

    acc_ref[...] += jnp.dot(x_ref[...], w_ref[0],
                            preferred_element_type=jnp.float32)

    @pl.when(k == pl.num_programs(2) - 1)
    def _():
        o_ref[...] = (acc_ref[...] + b_ref[0]).astype(o_ref.dtype)


def grouped_linear(gids, x, w, b, *, tile_rows, tile_n, tile_k, out_dtype):
    """y[i*tr:(i+1)*tr, :] = x_tile @ w[gids[i]] + b[gids[i]].

    gids: int32 [num_row_tiles]   group (node-type) index per row tile
    x   : [N_pad, C_in_pad]       row-padded, concatenated features
    w   : [T, C_in_pad, C_out_pad] cached packed weights (compute dtype)
    b   : [T, 1, C_out_pad]       cached packed f32 biases
    """
    n_pad, c_in_pad = x.shape
    _, _, c_out_pad = w.shape
    assert n_pad % tile_rows == 0
    assert c_in_pad % tile_k == 0 and c_out_pad % tile_n == 0
    num_tiles = n_pad // tile_rows
    num_n = c_out_pad // tile_n
    num_k = c_in_pad // tile_k

    flops = 2 * n_pad * c_in_pad * c_out_pad
    bytes_accessed = int(
        x.size * x.dtype.itemsize
        + w.size * w.dtype.itemsize
        + b.size * b.dtype.itemsize
        + n_pad * c_out_pad * jnp.dtype(out_dtype).itemsize
    )

    if num_k == 1:
        grid_spec = pltpu.PrefetchScalarGridSpec(
            num_scalar_prefetch=1,          # gids -> SMEM, visible to index maps
            grid=(num_tiles, num_n),
            in_specs=[
                pl.BlockSpec((tile_rows, c_in_pad), lambda i, j, gid: (i, 0)),
                pl.BlockSpec((1, c_in_pad, tile_n),
                             lambda i, j, gid: (gid[i], 0, j)),
                pl.BlockSpec((1, 1, tile_n), lambda i, j, gid: (gid[i], 0, j)),
            ],
            out_specs=pl.BlockSpec((tile_rows, tile_n), lambda i, j, gid: (i, j)),
        )
        kernel = _grouped_linear_kernel
        dims = ("parallel", "parallel")
    else:
        grid_spec = pltpu.PrefetchScalarGridSpec(
            num_scalar_prefetch=1,
            grid=(num_tiles, num_n, num_k),
            in_specs=[
                pl.BlockSpec((tile_rows, tile_k), lambda i, j, k, gid: (i, k)),
                pl.BlockSpec((1, tile_k, tile_n),
                             lambda i, j, k, gid: (gid[i], k, j)),
                pl.BlockSpec((1, 1, tile_n),
                             lambda i, j, k, gid: (gid[i], 0, j)),
            ],
            out_specs=pl.BlockSpec((tile_rows, tile_n),
                                   lambda i, j, k, gid: (i, j)),
            scratch_shapes=[pltpu.VMEM((tile_rows, tile_n), jnp.float32)],
        )
        kernel = _grouped_linear_kernel_kacc
        dims = ("parallel", "parallel", "arbitrary")

    return pl.pallas_call(
        kernel,
        out_shape=jax.ShapeDtypeStruct((n_pad, c_out_pad), out_dtype),
        grid_spec=grid_spec,
        compiler_params=pltpu.CompilerParams(
            dimension_semantics=dims,
            vmem_limit_bytes=_vmem_limit_bytes(),
        ),
        cost_estimate=pl.CostEstimate(
            flops=flops, transcendentals=0, bytes_accessed=bytes_accessed
        ),
    )(gids, x, w, b)


# ---------------------------------------------------------------------------
# Parameter init (mirrors Linear(..., weight_initializer='glorot')).
# ---------------------------------------------------------------------------
def glorot_uniform(key, fan_in, fan_out, dtype=jnp.float32):
    bound = (6.0 / (fan_in + fan_out)) ** 0.5
    return jax.random.uniform(
        key, (fan_in, fan_out), dtype=dtype, minval=-bound, maxval=bound
    )


def init_hetero_linear(key, in_channels_dict, out_channels):
    """Glorot-uniform weight [C_in, C_out] (transposed vs torch), zero bias."""
    params = {}
    keys = jax.random.split(key, len(in_channels_dict))
    for k, (node_type, c_in) in zip(keys, sorted(in_channels_dict.items())):
        params[node_type] = {
            "weight": glorot_uniform(k, c_in, out_channels),    # [C_in, C_out]
            "bias": jnp.zeros((1, out_channels), jnp.float32),  # [1, C_out]
        }
    return params


# ---------------------------------------------------------------------------
# One-time packing (cached): pad + stack + cast weights/biases.
# ---------------------------------------------------------------------------
def pack_hetero_linear_params(params, *, compute_dtype=None,
                              max_tile_k=1024, k_tile=512,
                              max_tile_n=512, n_tile=256):
    """Pack per-type params into cached stacked tensors + tiling plan.

    compute_dtype: jnp.bfloat16 halves weight+activation HBM traffic; fine on
    v5e as well as v6e/v7x (MXU takes bf16; accumulate/bias add stay f32).
    """
    node_types = sorted(params.keys())
    in_dtype = jnp.dtype(compute_dtype) if compute_dtype is not None else jnp.dtype(jnp.float32)
    c_out = int(params[node_types[0]]["weight"].shape[1])
    c_in_max = max(int(params[t]["weight"].shape[0]) for t in node_types)

    pack = _sublane_pack(in_dtype)
    c_in_pad, tile_k = _choose_k_tiling(c_in_max, pack,
                                        max_tile_k=max_tile_k, k_tile=k_tile)
    c_out_pad, tile_n = _choose_n_tiling(c_out, max_tile_n=max_tile_n,
                                         n_tile=n_tile)

    w_parts, b_parts = [], []
    for t in node_types:
        wt = params[t]["weight"]
        bt = params[t]["bias"].reshape(1, -1)
        c_in_t = wt.shape[0]
        w_parts.append(
            jnp.pad(wt, ((0, c_in_pad - c_in_t), (0, c_out_pad - c_out))
                    ).astype(in_dtype))
        b_parts.append(
            jnp.pad(bt, ((0, 0), (0, c_out_pad - c_out))).astype(jnp.float32))

    return {
        "node_types": node_types,
        "type_index": {t: i for i, t in enumerate(node_types)},
        "in_channels": {t: int(params[t]["weight"].shape[0]) for t in node_types},
        "w": jnp.stack(w_parts),            # [T, C_in_pad, C_out_pad]
        "b": jnp.stack(b_parts),            # [T, 1, C_out_pad]
        "c_in_pad": c_in_pad,
        "c_out": c_out,
        "c_out_pad": c_out_pad,
        "tile_k": tile_k,
        "tile_n": tile_n,
        "compute_dtype": in_dtype,
    }


# ---------------------------------------------------------------------------
# Forward: pack activations -> one grouped kernel -> unpack per type.
# ---------------------------------------------------------------------------
def hetero_linear_forward(packed, x_dict, *, tile_rows=None, out_dtype=None):
    """Mirrors HeteroLinear.forward: per-type y = x @ W + b, fused in one launch.

    packed     : output of pack_hetero_linear_params (weights cached/padded).
    tile_rows  : rows per grid step; default picked adaptively from node counts.
    out_dtype  : defaults to the input dtype; pass bf16 to halve output writes.
    Note: varying per-type node counts across calls triggers recompilation.
    """
    assert x_dict, "empty x_dict"
    node_types = list(x_dict.keys())
    in_dtype = packed["compute_dtype"]
    c_in_pad = packed["c_in_pad"]
    c_out = packed["c_out"]

    counts = [int(x_dict[t].shape[0]) for t in node_types]
    if tile_rows is None:
        tile_rows = _pick_tile_rows(counts, _sublane_pack(in_dtype))
    tile_rows = _round_up(max(int(tile_rows), 8), 8)

    if out_dtype is None:
        out_dtype = x_dict[node_types[0]].dtype

    # Pack features: pad each type to (multiple of tile_rows, c_in_pad).
    x_parts, tile_gids, spans = [], [], []
    row_off = 0
    for t, n in zip(node_types, counts):
        x = x_dict[t]
        assert x.shape[1] == packed["in_channels"][t], f"bad C_in for {t}"
        gi = packed["type_index"][t]
        n_pad = _round_up(max(n, 1), tile_rows)
        x_p = jnp.pad(x, ((0, n_pad - n), (0, c_in_pad - x.shape[1]))
                      ).astype(in_dtype)
        x_parts.append(x_p)
        tile_gids.extend([gi] * (n_pad // tile_rows))
        spans.append((t, row_off, n))
        row_off += n_pad
    x_all = jnp.concatenate(x_parts, axis=0) if len(x_parts) > 1 else x_parts[0]
    gids = jnp.asarray(tile_gids, dtype=jnp.int32)

    y_all = grouped_linear(
        gids, x_all, packed["w"], packed["b"],
        tile_rows=tile_rows, tile_n=packed["tile_n"], tile_k=packed["tile_k"],
        out_dtype=out_dtype,
    )

    # Unpack: real rows per type, real out_channels.
    out = {}
    for t, off, n in spans:
        out[t] = jax.lax.slice(y_all, (off, 0), (off + n, c_out))
    return out


# ---------------------------------------------------------------------------
# Tests
# ---------------------------------------------------------------------------
if __name__ == "__main__":
    key = jax.random.PRNGKey(0)

    # --- Test 1: small channels (single-K-step kernel, unpadded c_out=32) ---
    in_channels_dict = {"user": 8, "item": 12}
    out_channels = 32

    kp, ku, ki = jax.random.split(key, 3)
    params = init_hetero_linear(kp, in_channels_dict, out_channels)
    x_dict = {
        "user": jax.random.normal(ku, (16, in_channels_dict["user"]), jnp.float32),
        "item": jax.random.normal(ki, (24, in_channels_dict["item"]), jnp.float32),
    }

    packed_f32 = pack_hetero_linear_params(params)                 # cached once
    out_f32 = hetero_linear_forward(packed_f32, x_dict)
    out_f32 = jax.tree_util.tree_map(jax.block_until_ready, out_f32)
    for nt, x in x_dict.items():
        ref = x @ params[nt]["weight"] + params[nt]["bias"]
        assert out_f32[nt].shape == (x.shape[0], out_channels)
        assert jnp.allclose(out_f32[nt], ref, atol=1e-5, rtol=1e-5)

    # --- Test 1b: bf16 compute path (valid on v5e/v6e/v7x) ---
    packed_bf16 = pack_hetero_linear_params(params, compute_dtype=jnp.bfloat16)
    out_bf16 = hetero_linear_forward(packed_bf16, x_dict)
    out_bf16 = jax.tree_util.tree_map(jax.block_until_ready, out_bf16)
    for nt, x in x_dict.items():
        ref = (
            jnp.dot(x.astype(jnp.bfloat16),
                    params[nt]["weight"].astype(jnp.bfloat16),
                    preferred_element_type=jnp.float32)
            + params[nt]["bias"]
        )
        assert out_bf16[nt].shape == (x.shape[0], out_channels)
        assert jnp.allclose(out_bf16[nt], ref, atol=1e-2, rtol=1e-2)

    # --- Test 2: force the N/K-tiled accumulator path (small tile caps) ---
    in_channels_dict2 = {"user": 200, "item": 130}
    out_channels2 = 256
    kp2, ku2, ki2 = jax.random.split(jax.random.PRNGKey(1), 3)
    params2 = init_hetero_linear(kp2, in_channels_dict2, out_channels2)
    x_dict2 = {
        "user": jax.random.normal(ku2, (16, 200), jnp.float32),
        "item": jax.random.normal(ki2, (24, 130), jnp.float32),
    }
    packed2 = pack_hetero_linear_params(
        params2, max_tile_k=128, k_tile=128, max_tile_n=128, n_tile=128)
    out2 = hetero_linear_forward(packed2, x_dict2)
    out2 = jax.tree_util.tree_map(jax.block_until_ready, out2)
    for nt, x in x_dict2.items():
        ref = (jnp.dot(x, params2[nt]["weight"],
                       preferred_element_type=jnp.float32,
                       precision=jax.lax.Precision.HIGHEST)
               + params2[nt]["bias"])
        assert out2[nt].shape == (x.shape[0], out_channels2)
        assert jnp.allclose(out2[nt], ref, atol=2e-2, rtol=2e-2)

    print("KERNEL_OK")
</pallas_src>

<mosaic_0001>
module attributes {stable_mosaic.version = 11 : i64} {
  func.func @_grouped_linear_kernel(%arg0: i32, %arg1: i32, %arg2: memref<2xi32, #tpu.memory_space<smem>>, %arg3: memref<32x16xf32, #tpu.memory_space<vmem>>, %arg4: memref<1x16x32xf32, #tpu.memory_space<vmem>>, %arg5: memref<1x1x32xf32, #tpu.memory_space<vmem>>, %arg6: memref<32x32xf32, #tpu.memory_space<vmem>>) attributes {dimension_semantics = [#tpu.dimension_semantics<parallel>, #tpu.dimension_semantics<parallel>], iteration_bounds = array<i64: 2, 1>, scalar_prefetch = 1 : i64, scratch_operands = 0 : i64, tpu.core_type = #tpu.core_type<tc>, window_params = [{transform_indices = @transform_0, window_bounds = array<i64: 32, 16>}, {transform_indices = @transform_1, window_bounds = array<i64: 1, 16, 32>}, {transform_indices = @transform_2, window_bounds = array<i64: 1, 1, 32>}, {transform_indices = @transform_3, window_bounds = array<i64: 32, 32>}]} {
    %c0 = arith.constant 0 : index
    %c0_0 = arith.constant 0 : index
    %0 = vector.load %arg3[%c0, %c0_0] : memref<32x16xf32, #tpu.memory_space<vmem>>, vector<32x16xf32>
    %c0_1 = arith.constant 0 : index
    %c0_2 = arith.constant 0 : index
    %c0_3 = arith.constant 0 : index
    %1 = vector.load %arg4[%c0_1, %c0_2, %c0_3] : memref<1x16x32xf32, #tpu.memory_space<vmem>>, vector<1x16x32xf32>
    %2 = vector.shape_cast %1 : vector<1x16x32xf32> to vector<16x32xf32>
    %cst = arith.constant dense<0.000000e+00> : vector<32x32xf32>
    %3 = tpu.matmul %0, %2, %cst {dimension_numbers = #tpu.dot_dimension_numbers<[1], [0], [0], [1], [0, 0, 1, 1], [], []>} : vector<32x16xf32>, vector<16x32xf32>, vector<32x32xf32> -> vector<32x32xf32>
    %c0_4 = arith.constant 0 : index
    %c0_5 = arith.constant 0 : index
    %c0_6 = arith.constant 0 : index
    %4 = vector.load %arg5[%c0_4, %c0_5, %c0_6] : memref<1x1x32xf32, #tpu.memory_space<vmem>>, vector<1x1x32xf32>
    %5 = vector.shape_cast %4 : vector<1x1x32xf32> to vector<1x32xf32>
    %6 = vector.broadcast %5 : vector<1x32xf32> to vector<32x32xf32>
    %7 = arith.addf %3, %6 : vector<32x32xf32>
    %c0_7 = arith.constant 0 : index
    %c0_8 = arith.constant 0 : index
    %8 = vector.load %arg6[%c0_7, %c0_8] : memref<32x32xf32, #tpu.memory_space<vmem>>, vector<32x32xf32>
    tpu.vector_store %arg6[%c0_7, %c0_8], %7 {strides = array<i32>} : memref<32x32xf32, #tpu.memory_space<vmem>>, vector<32x32xf32>,
    return
  }
  func.func @transform_0(%arg0: i32, %arg1: i32, %arg2: memref<2xi32, #tpu.memory_space<smem>>) -> (i32, i32) {
    %c0_i32 = arith.constant 0 : i32
    %c0_i32_0 = arith.constant 0 : i32
    return %arg0, %c0_i32 : i32, i32
  }
  func.func @transform_1(%arg0: i32, %arg1: i32, %arg2: memref<2xi32, #tpu.memory_space<smem>>) -> (i32, i32, i32) {
    %0 = arith.index_cast %arg0 : i32 to index
    %1 = memref.load %arg2[%0] : memref<2xi32, #tpu.memory_space<smem>>
    %c0_i32 = arith.constant 0 : i32
    %c0_i32_0 = arith.constant 0 : i32
    return %1, %c0_i32, %arg1 : i32, i32, i32
  }
  func.func @transform_2(%arg0: i32, %arg1: i32, %arg2: memref<2xi32, #tpu.memory_space<smem>>) -> (i32, i32, i32) {
    %0 = arith.index_cast %arg0 : i32 to index
    %1 = memref.load %arg2[%0] : memref<2xi32, #tpu.memory_space<smem>>
    %c0_i32 = arith.constant 0 : i32
    %c0_i32_0 = arith.constant 0 : i32
    return %1, %c0_i32, %arg1 : i32, i32, i32
  }
  func.func @transform_3(%arg0: i32, %arg1: i32, %arg2: memref<2xi32, #tpu.memory_space<smem>>) -> (i32, i32) {
    %c0_i32 = arith.constant 0 : i32
    return %arg0, %arg1 : i32, i32
  }
}

</mosaic_0001>

<bundles_post_ra>
// kernel: tpu_custom_call.1
= control target key start
LH: loop header
LB: loop body
LE: loop exit
PB: predicated region body
PF: predicated region fallthrough
CT: control target
= control target key end

     0   :  { %s680_s0 = inlined_call_operand.vmem [shape: s32[2], index: 0, kind: input, shape index: {}]   ;;  %s681_s1 = inlined_call_operand.vmem [shape: f32[64,16], index: 1, kind: input, shape index: {}]   ;;  %s682_s2 = inlined_call_operand.vmem [shape: f32[2,16,32], index: 2, kind: input, shape index: {}]   ;;  %s683_s3 = inlined_call_operand.vmem [shape: f32[2,1,32], index: 3, kind: input, shape index: {}]   ;;  %s684_s4 = inlined_call_operand.vmem [shape: f32[64,32], index: 4, kind: output, shape index: {}]  }
   0x1   :  { %s9_s17 = sshll.u32 %s680_s0, 4  ;;  %s10_s17 = int_to_ptr.vmem [resolvable:$true] %s9_s17 }
   0x2   :  { %s558_s18 = scalar_lea.vmem %s10_s17, 16  ;;  %p563_p1 = scmp.lt.s32.totalorder %s10_s17, %s10_s17 }
   0x3   :  { %p559_p0 = scmp.ne.s32.totalorder %s10_s17, %s558_s18  ;;  %p564_p2 = scmp.lt.s32.totalorder %s558_s18, %s558_s18 }
   0x5   :  { %p565_p3 = por %p564_p2, %p563_p1 }
   0x7   :  { %p566_p4 = pnand %p565_p3, %p559_p0 }
   0x9   :  { %569 = shalt.err (!%p566_p4)  }
   0xa   :  { %s596_s19 = smov [#allocation3]  }
   0xb   :  { %12 = dma.vmem_to_smem %s10_s17, 16, %s596_s19, [#allocation2] }
   0xc   :  { %582 = dma.done.wait [#allocation2], 16 }
   0xd   :  { %583 = vsyncadd [#allocation2], 4294967280 }
   0xe   :  { %14 = sfence }
   0xf   :  { %s625_s20 = smov 0   ;;  %s627_s21 = smov 0  }
  0x10   :  { %s629_s22 = smov 0  }
  0x11 LB: > { %s32_s0 = sadd.s32 1, %s590_s21  ;;  %p496_p5 = scmp.ge.s32.totalorder %s594_s22, 1  ;;  %s594_s22 = sphi %s629_s22, %s20_s22   ;;  %s590_s21 = sphi %s627_s21, %s686_s21   ;;  %s586_s20 = sphi %s625_s20, %s685_s20  }
  0x12   : > { %p34_p6 = scmp.ge.s32.totalorder %s32_s0, 2  ;;  %p195_p7 = scmp.lt.s32.totalorder %s594_s22, 3 }
  0x14   : > { %s688_s0 = smov (%p34_p6, %s32_s0), 0  ;;  %p196_p8 = pnand %p496_p5, %p195_p7 }
  0x15   : > { %s244_s23 = sld [smem:[#allocation3 + %s586_s20]] (!%p196_p8)  ;;  %s497_s24 = sshll.u32 (!%p196_p8), %s586_s20, 2  ;;  %vm284_vm0 = vcmask (!%p196_p8), 130048   ;;  %vm382_vm1 = vcmask (!%p196_p8), 261120  }
  0x16   : > { %199 = sbr.rel (%p196_p8) target bundleno = 256 (0x100), region = 32  ;;  %p239_p9 = scmp.lt.s32.totalorder (!%p196_p8), %s497_s24, 7 }
  0x17   : > { %s254_s7 = sld [smem:[#allocation3 + %s586_s20]] (!%p196_p8) }
  0x1b   : > { %p245_p10 = scmp.lt.s32.totalorder (!%p196_p8), %s244_s23, 1 }
  0x1d   : > { %s690_s24 = smov (!%p239_p9, %s497_s24), 7  ;;  %s692_s23 = smov (!%p245_p10, %s244_s23), 1 }
  0x1e   : > { %s498_s25 = sshll.u32 %s690_s24, 3  ;;  %s510_s29 = sshll.u32 %s692_s23, 4 }
  0x1f   : > { %s242_s28 = scalar_lea.vmem %s681_s1, %s498_s25  ;;  %s252_s6 = scalar_lea.vmem %s682_s2, %s510_s29 }
  0x20   : > { %v271_v0 = vld [vmem:[%s242_s28] sm:$0xff]  ;;  %v273_v1 = vld [vmem:[%s242_s28 + $0x10] sm:$0xff]  ;;  %v276_v3 = vld [vmem:[%s252_s6 + $0x8] sm:$0xff]  ;;  %p255_p11 = scmp.lt.s32.totalorder %s254_s7, 1  ;;  %s269_s13 = scalar_lea.vmem %s684_s4, %s498_s25 }
  0x21   : > { %521 = vmatprep.mubr.msk.f32.mxu0 %vm284_vm0, %v271_v0  ;;  %524 = vmatprep.mubr.msk.f32.mxu1 %vm284_vm0, %v273_v1  ;;  %v275_v2 = vld [vmem:[%s252_s6] sm:$0xff]  ;;  %v272_v5 = vld [vmem:[%s242_s28 + $0x8] sm:$0xff]  ;;  %v274_v6 = vld [vmem:[%s242_s28 + $0x18] sm:$0xff] }
  0x22   : > { %v527_v4 = vpack.c.bf16 %v276_v3, %v275_v2  ;;  %s694_s7 = smov (!%p255_p11, %s254_s7), 1 }
  0x23   : > { %s260_s10 = scalar_lea.vmem %s683_s3, %s694_s7 }
  0x24   : > { %528 = vmatprep.subr.bf16.mxu0 %v527_v4  ;;  %531 = vmatprep.subr.bf16.mxu1 %v527_v4  ;;  %v503_v7 = vld [vmem:[%s260_s10] ss:$0 sm:$0xff] }
  0x25   : > { %530 = vmatpush3.bf16.msra.mxu0 %v527_v4  ;;  %532 = vmatpush3.bf16.msra.mxu1 %v527_v4 }
  0x28   : > { %522 = vmatmul.mubr.msk.f32.vlgmr.msra.gmra.mrb[0].mxu0 %vm284_vm0, %v272_v5  ;;  %525 = vmatmul.mubr.msk.f32.vlgmr.msra.gmra.mrb[0].mxu1 %vm284_vm0, %v274_v6 }
  0xfb   : > { %v523_v8 = vpop.f32.mrb[0].mxu0  ;;  %v526_v9 = vpop.f32.mrb[0].mxu1 }
  0xfc   : > { %v363_v10 = vpop.f32.mrb[1].mxu0  ;;  %v373_v11 = vpop.f32.mrb[1].mxu1  ;;  %v369_v14 = vadd.f32 %v523_v8, %v503_v7  ;;  %v379_v15 = vadd.f32 %v526_v9, %v503_v7 }
  0xfd   : > { %v364_v12 = vadd.f32 %v503_v7, %v363_v10  ;;  %v374_v13 = vadd.f32 %v503_v7, %v373_v11 }
  0xfe   : > { %384 = vst.msk [vmem:[%s269_s13 + $0x8] sm:$0xff] %vm382_vm1, %v369_v14  ;;  %386 = vst.msk [vmem:[%s269_s13 + $0x18] sm:$0xff] %vm382_vm1, %v379_v15 }
  0xff   : > { %383 = vst.msk [vmem:[%s269_s13] sm:$0xff] %vm382_vm1, %v364_v12  ;;  %385 = vst.msk [vmem:[%s269_s13 + $0x10] sm:$0xff] %vm382_vm1, %v374_v13 }
 0x100 PF: > { %s20_s22 = sadd.s32 1, %s594_s22   ;;  %s685_s20 = smov %s590_s21 }
 0x101   : > { %p17_p12 = scmp.ge.s32.totalorder %s20_s22, 4   ;;  %s686_s21 = smov %s688_s0 }
 0x103   :  { %19 = sbr.rel (!%p17_p12) target bundleno = 17 (0x11), region = 68 }

</bundles_post_ra>
